<compile_context>
chip_gen: v6e
topology: v6e:2x2x1
jax: 0.10.0
libtpu: 0.0.40
codegen_flags: <defaults>
</compile_context>

<pallas_src>
import functools

import jax
import jax.numpy as jnp
from jax.experimental import pallas as pl
from jax.experimental.pallas import tpu as pltpu

BN_EPS = 1e-5
_LANE = 128
_SUBLANE = 8


def _round_up(x, m):
    return ((x + m - 1) // m) * m


def _vmem_capacity_bytes(default=64 * 1024 * 1024):
    """Physical VMEM per TensorCore; conservative 64 MiB (v7x) fallback."""
    try:
        info = pltpu.get_tpu_info()
    except Exception:
        return default
    for attr in ("vmem_capacity_bytes", "vmem_bytes", "vmem_size_bytes"):
        v = getattr(info, attr, None)
        if v:
            return int(v)
    return default


# ---------------------------------------------------------------------------
# Kernel 1: whole network fused into ONE pallas_call (weights resident in VMEM)
# ---------------------------------------------------------------------------
def _fused_mlp_kernel(*refs, n_layers):
    x_ref = refs[0]
    o_ref = refs[-1]
    h = x_ref[...]                      # bf16 activations
    for li in range(n_layers):
        w = refs[1 + 2 * li][...]       # bf16 weights (BN pre-folded)
        b = refs[2 + 2 * li][...]       # f32 bias (BN pre-folded)
        y = jnp.dot(h, w, preferred_element_type=jnp.float32) + b
        if li < n_layers - 1:
            y = jnp.maximum(y, 0.0)     # ReLU; post-BN folded into next layer; dropout = id (eval)
            h = y.astype(jnp.bfloat16)
        else:
            h = y
    o_ref[...] = h.astype(o_ref.dtype)


def _mlp_single_call(xp, folded, vmem_cap):
    """One kernel launch for the whole (small) network; everything lives in VMEM."""
    Mp = xp.shape[0]
    Np_last = folded[-1][0].shape[1]
    flat = [xp]
    flops = 0
    needed = xp.size * xp.dtype.itemsize + Mp * Np_last * 4
    for w, b in folded:
        flat += [w, b]
        flops += 2 * Mp * w.shape[0] * w.shape[1]
        needed += w.size * w.dtype.itemsize + b.size * b.dtype.itemsize

    vmem_limit = int(min(0.75 * vmem_cap, max(32 << 20, 2 * needed + (4 << 20))))
    return pl.pallas_call(
        functools.partial(_fused_mlp_kernel, n_layers=len(folded)),
        out_shape=jax.ShapeDtypeStruct((Mp, Np_last), jnp.float32),
        in_specs=[pl.BlockSpec(memory_space=pltpu.MemorySpace.VMEM)] * len(flat),
        out_specs=pl.BlockSpec(memory_space=pltpu.MemorySpace.VMEM),
        compiler_params=pltpu.CompilerParams(vmem_limit_bytes=vmem_limit),
        cost_estimate=pl.CostEstimate(flops=int(flops), transcendentals=0,
                                      bytes_accessed=int(needed)),
    )(*flat)


# ---------------------------------------------------------------------------
# Kernel 2: per-layer streaming matmul (weights streamed from HBM, pipelined)
# ---------------------------------------------------------------------------
def _linear_tiled_kernel(x_ref, w_ref, b_ref, o_ref, acc_ref, *, apply_relu):
    k = pl.program_id(2)
    part = jnp.dot(x_ref[...], w_ref[...], preferred_element_type=jnp.float32)

    @pl.when(k == 0)
    def _():
        acc_ref[...] = part             # first k-step assigns: no zero-init write+read

    @pl.when(k != 0)
    def _():
        acc_ref[...] += part

    @pl.when(k == pl.num_programs(2) - 1)
    def _():
        y = acc_ref[...] + b_ref[...]
        if apply_relu:
            y = jnp.maximum(y, 0.0)
        o_ref[...] = y.astype(o_ref.dtype)


def _pick_tile(dim, cap):
    for t in (1024, 512, 384, 256, 128):
        if t <= cap and dim % t == 0:
            return t
    return min(dim, 128)


def _linear_tiled(x, w, b, apply_relu, *, out_dtype, vmem_cap):
    """y = (relu)(x @ w + b); x:(M,K) bf16, w:(K,N) bf16, b:(1,N) f32; dims already padded."""
    M, K = x.shape
    Kw, N = w.shape
    assert K == Kw

    # Bigger row blocks cut weight re-streaming (weights are re-fetched once per i-block).
    if M <= 512:
        tm = M
    else:
        tm = 512 if M % 512 == 0 else 256
    assert M % tm == 0

    out_itemsize = jnp.dtype(out_dtype).itemsize
    # Double-buffered footprint must fit a conservative scoped-VMEM budget
    # (v7x: 64 MiB physical per TC; v5e/v6e: 128 MiB).
    budget = min(int(0.60 * vmem_cap), 48 << 20)
    tn = tk = 128
    footprint = 0
    for cap in (1024, 512, 256, 128):
        tn_c = _pick_tile(N, cap)
        tk_c = _pick_tile(K, cap)
        # Keep >= 2 tiles along N (when N allows) so the "parallel" N axis can shard
        # across v7x's 2 TensorCores.
        if N >= 256 and N // tn_c < 2:
            tn_c = _pick_tile(N, max(tn_c // 2, 128))
        fp = (2 * (tm * tk_c * x.dtype.itemsize
                   + tk_c * tn_c * w.dtype.itemsize
                   + tm * tn_c * out_itemsize
                   + tn_c * b.dtype.itemsize)
              + tm * tn_c * 4)  # f32 accumulator scratch
        if fp <= budget or cap == 128:
            tn, tk, footprint = tn_c, tk_c, fp
            break

    grid = (M // tm, N // tn, K // tk)
    vmem_limit = int(min(0.75 * vmem_cap, max(32 << 20, footprint + (8 << 20))))

    flops = 2 * M * K * N
    bytes_accessed = (M * K * x.dtype.itemsize * (N // tn)        # x re-read per j-block
                      + K * N * w.dtype.itemsize * (M // tm)      # w re-read per i-block
                      + N * b.dtype.itemsize * (M // tm)
                      + M * N * out_itemsize)

    return pl.pallas_call(
        functools.partial(_linear_tiled_kernel, apply_relu=apply_relu),
        out_shape=jax.ShapeDtypeStruct((M, N), out_dtype),
        grid_spec=pltpu.PrefetchScalarGridSpec(
            num_scalar_prefetch=0,
            grid=grid,
            in_specs=[
                pl.BlockSpec((tm, tk), lambda i, j, k: (i, k)),   # x (bf16)
                pl.BlockSpec((tk, tn), lambda i, j, k: (k, j)),   # w (bf16, BN pre-folded)
                pl.BlockSpec((1, tn), lambda i, j, k: (0, j)),    # bias (f32, BN pre-folded)
            ],
            out_specs=pl.BlockSpec((tm, tn), lambda i, j, k: (i, j)),
            scratch_shapes=[pltpu.VMEM((tm, tn), jnp.float32)],
        ),
        compiler_params=pltpu.CompilerParams(
            dimension_semantics=("parallel", "parallel", "arbitrary"),
            vmem_limit_bytes=vmem_limit),
        cost_estimate=pl.CostEstimate(flops=int(flops), transcendentals=0,
                                      bytes_accessed=int(bytes_accessed)),
    )(x, w, b)


# ---------------------------------------------------------------------------
# Parameters: raw (torch-like) init, then fold BN affines + pad + cast once
# ---------------------------------------------------------------------------
def init_raw_params(key, input_size, num_classes, hidden_layers):
    def bn_params(k, dim):
        k1, k2, k3, k4 = jax.random.split(k, 4)
        gamma = 1.0 + 0.1 * jax.random.normal(k1, (dim,), jnp.float32)
        beta = 0.1 * jax.random.normal(k2, (dim,), jnp.float32)
        mean = 0.1 * jax.random.normal(k3, (dim,), jnp.float32)
        var = jax.random.uniform(k4, (dim,), jnp.float32, 0.5, 1.5)
        return gamma, beta, mean, var

    dims = [input_size] + list(hidden_layers) + [num_classes]
    params = {"linears": [], "bn_hidden": []}
    key, kbn = jax.random.split(key)
    params["bn_in"] = bn_params(kbn, input_size)            # BatchNorm1d(input_size)
    for li in range(len(dims) - 1):
        in_dim, out_dim = dims[li], dims[li + 1]
        key, kw, kb, kbn = jax.random.split(key, 4)
        bound = float(in_dim) ** -0.5
        w = jax.random.uniform(kw, (in_dim, out_dim), jnp.float32, -bound, bound)
        b = jax.random.uniform(kb, (out_dim,), jnp.float32, -bound, bound)
        params["linears"].append((w, b))                    # w stored as torch weight.T
        if li < len(dims) - 2:
            params["bn_hidden"].append(bn_params(kbn, out_dim))
    return params


def fold_and_pad_params(raw, pad_to=_LANE):
    """Fold every BN affine into the following Linear (in f32), pad feature dims to multiples
    of 128, then cast weights to bf16 (biases stay f32)."""
    def bn_affine(bn):
        gamma, beta, mean, var = bn
        s = gamma / jnp.sqrt(var + BN_EPS)
        t = beta - mean * s
        return s, t

    n = len(raw["linears"])
    pre = bn_affine(raw["bn_in"])
    folded = []
    for li, (w, b) in enumerate(raw["linears"]):
        s, t = pre
        w_f = s[:, None] * w          # (h*s + t) @ W + b  ==  h @ (s*W) + (t @ W + b)
        b_f = b + t @ w
        K, N = w_f.shape
        Kp, Np = _round_up(K, pad_to), _round_up(N, pad_to)
        w_p = jnp.pad(w_f, ((0, Kp - K), (0, Np - N))).astype(jnp.bfloat16)
        b_p = jnp.pad(b_f, (0, Np - N)).reshape(1, Np).astype(jnp.float32)
        folded.append((w_p, b_p))
        if li < n - 1:
            pre = bn_affine(raw["bn_hidden"][li])  # post-ReLU BN folds into the NEXT layer
    return folded


# ---------------------------------------------------------------------------
# Forward passes
# ---------------------------------------------------------------------------
def simple_ffnn_forward(x, folded, out_dim, *, mode="auto"):
    """Eval-mode forward. mode: 'auto' | 'single' | 'per_layer'."""
    M, D = x.shape
    D0p = folded[0][0].shape[0]
    Mp = _round_up(M, _SUBLANE) if M <= 512 else _round_up(M, 256)
    xp = jnp.pad(x, ((0, Mp - M), (0, D0p - D))).astype(jnp.bfloat16)

    vmem_cap = _vmem_capacity_bytes()

    if mode == "auto":
        param_bytes = sum(w.size * w.dtype.itemsize + b.size * b.dtype.itemsize
                          for w, b in folded)
        act_bytes = (xp.size + Mp * max(w.shape[1] for w, _ in folded)) * 2
        needed = param_bytes + act_bytes
        # Fused single call only for small configs; medium/large use the streaming path,
        # whose pipelined BlockSpecs overlap weight DMA with compute.
        mode = "single" if needed <= min(8 << 20, vmem_cap // 8) else "per_layer"

    if mode == "single":
        out = _mlp_single_call(xp, folded, vmem_cap)
    else:
        h = xp
        n = len(folded)
        for li, (w, b) in enumerate(folded):
            last = li == n - 1
            h = _linear_tiled(h, w, b, apply_relu=not last,
                              out_dtype=jnp.float32 if last else jnp.bfloat16,
                              vmem_cap=vmem_cap)
        out = h
    return out[:M, :out_dim].astype(jnp.float32)


def simple_ffnn_reference(x, raw):
    """Pure-JAX f32 reference with the exact (unfolded) PyTorch eval-mode semantics."""
    gamma, beta, mean, var = raw["bn_in"]
    h = (x - mean) / jnp.sqrt(var + BN_EPS) * gamma + beta
    n = len(raw["linears"])
    for li, (w, b) in enumerate(raw["linears"]):
        h = h @ w + b
        if li < n - 1:
            h = jnp.maximum(h, 0.0)
            gamma, beta, mean, var = raw["bn_hidden"][li]
            h = (h - mean) / jnp.sqrt(var + BN_EPS) * gamma + beta
            # Dropout(p) is identity in eval mode.
    return h


# ---------------------------------------------------------------------------
if __name__ == "__main__":
    # Small, TPU-friendly shapes (non-multiple-of-128 dims exercise the padding path);
    # scaled-down analogue of hidden_layers = [8192, 4096, 2048, 1024].
    batch, input_size, num_classes = 8, 200, 10
    hidden_layers = [256, 192]

    key = jax.random.PRNGKey(0)
    key, kx = jax.random.split(key)
    x = jax.random.normal(kx, (batch, input_size), jnp.float32)

    raw = init_raw_params(key, input_size, num_classes, hidden_layers)
    folded = fold_and_pad_params(raw)

    ref = simple_ffnn_reference(x, raw)

    out_single = jax.block_until_ready(
        simple_ffnn_forward(x, folded, num_classes, mode="single"))
    out_tiled = jax.block_until_ready(
        simple_ffnn_forward(x, folded, num_classes, mode="per_layer"))

    assert out_single.shape == (batch, num_classes)
    assert out_tiled.shape == (batch, num_classes)
    # bf16 weights/activations with f32 accumulation -> looser tolerance vs the f32 reference.
    assert jnp.allclose(out_single, ref, atol=5e-2, rtol=5e-2), "single-call mismatch vs reference"
    assert jnp.allclose(out_tiled, ref, atol=5e-2, rtol=5e-2), "per-layer mismatch vs reference"

    print("KERNEL_OK")
</pallas_src>

<mosaic_0001>
module attributes {stable_mosaic.version = 11 : i64} {
  func.func @_fused_mlp_kernel(%arg0: memref<8x256xbf16, #tpu.memory_space<vmem>>, %arg1: memref<256x256xbf16, #tpu.memory_space<vmem>>, %arg2: memref<1x256xf32, #tpu.memory_space<vmem>>, %arg3: memref<256x256xbf16, #tpu.memory_space<vmem>>, %arg4: memref<1x256xf32, #tpu.memory_space<vmem>>, %arg5: memref<256x128xbf16, #tpu.memory_space<vmem>>, %arg6: memref<1x128xf32, #tpu.memory_space<vmem>>, %arg7: memref<8x128xf32, #tpu.memory_space<vmem>>) attributes {dimension_semantics = [], scalar_prefetch = 0 : i64, scratch_operands = 0 : i64, tpu.core_type = #tpu.core_type<tc>} {
    %c0 = arith.constant 0 : index
    %c0_0 = arith.constant 0 : index
    %0 = vector.load %arg0[%c0, %c0_0] : memref<8x256xbf16, #tpu.memory_space<vmem>>, vector<8x256xbf16>
    %c0_1 = arith.constant 0 : index
    %c0_2 = arith.constant 0 : index
    %1 = vector.load %arg1[%c0_1, %c0_2] : memref<256x256xbf16, #tpu.memory_space<vmem>>, vector<256x256xbf16>
    %c0_3 = arith.constant 0 : index
    %c0_4 = arith.constant 0 : index
    %2 = vector.load %arg2[%c0_3, %c0_4] : memref<1x256xf32, #tpu.memory_space<vmem>>, vector<1x256xf32>
    %cst = arith.constant dense<0.000000e+00> : vector<8x256xf32>
    %3 = tpu.matmul %0, %1, %cst {dimension_numbers = #tpu.dot_dimension_numbers<[1], [0], [0], [1], [0, 0, 1, 1], [], []>} : vector<8x256xbf16>, vector<256x256xbf16>, vector<8x256xf32> -> vector<8x256xf32>
    %4 = vector.broadcast %2 : vector<1x256xf32> to vector<8x256xf32>
    %5 = arith.addf %3, %4 : vector<8x256xf32>
    %cst_5 = arith.constant 0.000000e+00 : f32
    %6 = vector.broadcast %cst_5 : f32 to vector<8x256xf32>
    %7 = arith.maximumf %5, %6 : vector<8x256xf32>
    %8 = arith.truncf %7 : vector<8x256xf32> to vector<8x256xbf16>
    %c0_6 = arith.constant 0 : index
    %c0_7 = arith.constant 0 : index
    %9 = vector.load %arg3[%c0_6, %c0_7] : memref<256x256xbf16, #tpu.memory_space<vmem>>, vector<256x256xbf16>
    %c0_8 = arith.constant 0 : index
    %c0_9 = arith.constant 0 : index
    %10 = vector.load %arg4[%c0_8, %c0_9] : memref<1x256xf32, #tpu.memory_space<vmem>>, vector<1x256xf32>
    %cst_10 = arith.constant dense<0.000000e+00> : vector<8x256xf32>
    %11 = tpu.matmul %8, %9, %cst_10 {dimension_numbers = #tpu.dot_dimension_numbers<[1], [0], [0], [1], [0, 0, 1, 1], [], []>} : vector<8x256xbf16>, vector<256x256xbf16>, vector<8x256xf32> -> vector<8x256xf32>
    %12 = vector.broadcast %10 : vector<1x256xf32> to vector<8x256xf32>
    %13 = arith.addf %11, %12 : vector<8x256xf32>
    %cst_11 = arith.constant 0.000000e+00 : f32
    %14 = vector.broadcast %cst_11 : f32 to vector<8x256xf32>
    %15 = arith.maximumf %13, %14 : vector<8x256xf32>
    %16 = arith.truncf %15 : vector<8x256xf32> to vector<8x256xbf16>
    %c0_12 = arith.constant 0 : index
    %c0_13 = arith.constant 0 : index
    %17 = vector.load %arg5[%c0_12, %c0_13] : memref<256x128xbf16, #tpu.memory_space<vmem>>, vector<256x128xbf16>
    %c0_14 = arith.constant 0 : index
    %c0_15 = arith.constant 0 : index
    %18 = vector.load %arg6[%c0_14, %c0_15] : memref<1x128xf32, #tpu.memory_space<vmem>>, vector<1x128xf32>
    %cst_16 = arith.constant dense<0.000000e+00> : vector<8x128xf32>
    %19 = tpu.matmul %16, %17, %cst_16 {dimension_numbers = #tpu.dot_dimension_numbers<[1], [0], [0], [1], [0, 0, 1, 1], [], []>} : vector<8x256xbf16>, vector<256x128xbf16>, vector<8x128xf32> -> vector<8x128xf32>
    %20 = vector.broadcast %18 : vector<1x128xf32> to vector<8x128xf32>
    %21 = arith.addf %19, %20 : vector<8x128xf32>
    %c0_17 = arith.constant 0 : index
    %c0_18 = arith.constant 0 : index
    %22 = vector.load %arg7[%c0_17, %c0_18] : memref<8x128xf32, #tpu.memory_space<vmem>>, vector<8x128xf32>
    tpu.vector_store %arg7[%c0_17, %c0_18], %21 {strides = array<i32>} : memref<8x128xf32, #tpu.memory_space<vmem>>, vector<8x128xf32>,
    return
  }
}

</mosaic_0001>

<bundles_post_ra>
// kernel: tpu_custom_call.1
= control target key start
LH: loop header
LB: loop body
LE: loop exit
PB: predicated region body
PF: predicated region fallthrough
CT: control target
= control target key end

     0   :  { %12 = vsyncpa [#allocation3], 0  ;;  %s1195_s0 = inlined_call_operand.hbm [shape: bf16[8,256], index: 0, kind: input, shape index: {}]   ;;  %s1196_s1 = inlined_call_operand.hbm [shape: bf16[256,256], index: 1, kind: input, shape index: {}]   ;;  %s1197_s2 = inlined_call_operand.vmem [shape: f32[1,256], index: 2, kind: input, shape index: {}]   ;;  %s1198_s3 = inlined_call_operand.hbm [shape: bf16[256,256], index: 3, kind: input, shape index: {}]   ;;  %s1199_s4 = inlined_call_operand.vmem [shape: f32[1,256], index: 4, kind: input, shape index: {}]   ;;  %s1200_s5 = inlined_call_operand.hbm [shape: bf16[256,128], index: 5, kind: input, shape index: {}]   ;;  %s1201_s6 = inlined_call_operand.vmem [shape: f32[1,128], index: 6, kind: input, shape index: {}]   ;;  %s1202_s7 = inlined_call_operand.hbm [shape: f32[8,128], index: 7, kind: output, shape index: {}]  }
   0x1   :  { %13 = vsyncpa [#allocation6], 0 }
   0x2   :  { %14 = vsyncpa [#allocation9], 0 }
   0x3   :  { %15 = vsyncpa [#allocation4], 0  ;;  %s1116_s24 = smov [#allocation5]  }
   0x4   :  { %s31_s25 = sshll.u32 %s1116_s24, 4  ;;  %s32_s25 = int_to_ptr.vmem [resolvable:$true] %s31_s25 }
   0x5   :  { %s1016_s26 = scalar_lea.vmem %s32_s25, 4096  ;;  %p1021_p1 = scmp.lt.s32.totalorder %s32_s25, %s32_s25 }
   0x6   :  { %p1017_p0 = scmp.ne.s32.totalorder %s32_s25, %s1016_s26  ;;  %p1022_p2 = scmp.lt.s32.totalorder %s1016_s26, %s1016_s26 }
   0x8   :  { %p1023_p3 = por %p1022_p2, %p1021_p1 }
   0xa   :  { %p1024_p4 = pnand %p1023_p3, %p1017_p0 }
   0xc   :  { %1027 = shalt.err (!%p1024_p4)
}
   0xd   :  { %s1117_s27 = smov 128   ;;  %s1118_s28 = smov 8  }
   0xe   :  { %37 = dma.hbm_to_vmem [thread:$0]  %s1196_s1, 4096, %s32_s25, [#allocation6], %s1117_s27, %s1117_s27, %s1118_s28  }
   0xf   :  { %s1119_s8 = smov [#allocation2]   ;;  %s1120_s10 = smov [#allocation7]  }
  0x10   :  { %s22_s9 = sshll.u32 %s1119_s8, 4  ;;  %s45_s11 = sshll.u32 %s1120_s10, 4  ;;  %s23_s9 = int_to_ptr.vmem [resolvable:$true] %s22_s9  ;;  %s46_s11 = int_to_ptr.vmem [resolvable:$true] %s45_s11 }
  0x11   :  { %s1036_s12 = scalar_lea.vmem %s23_s9, 128  ;;  %p1041_p6 = scmp.lt.s32.totalorder %s23_s9, %s23_s9 }
  0x12   :  { %p1037_p5 = scmp.ne.s32.totalorder %s23_s9, %s1036_s12  ;;  %p1042_p7 = scmp.lt.s32.totalorder %s1036_s12, %s1036_s12 }
  0x14   :  { %p1043_p8 = por %p1042_p7, %p1041_p6 }
  0x16   :  { %p1044_p9 = pnand %p1043_p8, %p1037_p5 }
  0x18   :  { %1047 = shalt.err (!%p1044_p9)
}
  0x19   :  { %25 = dma.hbm_to_vmem [thread:$0]  %s1195_s0, 128, %s23_s9, [#allocation3]  }
  0x1a   :  { %s1056_s15 = scalar_lea.vmem %s46_s11, 4096  ;;  %p1061_p11 = scmp.lt.s32.totalorder %s46_s11, %s46_s11 }
  0x1b   :  { %p1057_p10 = scmp.ne.s32.totalorder %s46_s11, %s1056_s15  ;;  %p1062_p12 = scmp.lt.s32.totalorder %s1056_s15, %s1056_s15 }
  0x1d   :  { %p1063_p13 = por %p1062_p12, %p1061_p11 }
  0x1f   :  { %p1064_p0 = pnand %p1063_p13, %p1057_p10 }
  0x21   :  { %1067 = shalt.err (!%p1064_p0)
}
  0x22   :  { %51 = dma.hbm_to_vmem [thread:$0]  %s1198_s3, 4096, %s46_s11, [#allocation6], %s1117_s27, %s1117_s27, %s1118_s28  }
  0x23   :  { %s1121_s17 = smov [#allocation8]  }
  0x24   :  { %s59_s18 = sshll.u32 %s1121_s17, 4  ;;  %s60_s18 = int_to_ptr.vmem [resolvable:$true] %s59_s18 }
  0x25   :  { %s1076_s19 = scalar_lea.vmem %s60_s18, 2048  ;;  %p1081_p2 = scmp.lt.s32.totalorder %s60_s18, %s60_s18 }
  0x26   :  { %p1077_p1 = scmp.ne.s32.totalorder %s60_s18, %s1076_s19  ;;  %p1082_p3 = scmp.lt.s32.totalorder %s1076_s19, %s1076_s19 }
  0x28   :  { %p1083_p4 = por %p1082_p3, %p1081_p2 }
  0x2a   :  { %p1084_p5 = pnand %p1083_p4, %p1077_p1 }
  0x2c   :  { %1087 = shalt.err (!%p1084_p5)
}
  0x2d   :  { %s1122_s0 = smov 64   ;;  %s1123_s20 = smov 4  }
  0x2e   :  { %65 = dma.hbm_to_vmem [thread:$0]  %s1200_s5, 2048, %s60_s18, [#allocation9], %s1122_s0, %s1122_s0, %s1123_s20  }
  0x2f   :  { %1108 = dma.done.wait [#allocation3], 128  }
  0x30   :  { %1109 = vsyncadd [#allocation3], 4294967168 }
  0x31   :  { %1110 = dma.done.wait [#allocation6], 8192  }
  0x32   :  { %1111 = vsyncadd [#allocation6], 4294959104 }
  0x33   :  { %1112 = dma.done.wait [#allocation9], 2048  }
  0x34   :  { %1113 = vsyncadd [#allocation9], 4294965248  ;;  %v894_v0 = vld [vmem:[#allocation5 + $0x74] ss:$8 sps:$4 sm:$0xff]   ;;  %v896_v1 = vld [vmem:[#allocation5 + $0x70] ss:$8 sps:$4 sm:$0xff]  }
  0x35   :  { %293 = vmatprep.subr.bf16.mxu0 %v894_v0  ;;  %v897_v2 = vld [vmem:[#allocation5 + $0x64] ss:$8 sps:$4 sm:$0xff]   ;;  %v899_v3 = vld [vmem:[#allocation5 + $0x60] ss:$8 sps:$4 sm:$0xff]   ;;  %v900_v4 = vld [vmem:[#allocation5 + $0x54] ss:$8 sps:$4 sm:$0xff]  }
  0x36   :  { %294 = vmatpush1.bf16.msra.mxu0 %v896_v1  ;;  %v902_v5 = vld [vmem:[#allocation5 + $0x50] ss:$8 sps:$4 sm:$0xff]   ;;  %v903_v6 = vld [vmem:[#allocation5 + $0x44] ss:$8 sps:$4 sm:$0xff]   ;;  %v905_v7 = vld [vmem:[#allocation5 + $0x40] ss:$8 sps:$4 sm:$0xff]  }
  0x37   :  { %295 = vmatprep.subr.bf16.mxu0 %v897_v2  ;;  %v906_v8 = vld [vmem:[#allocation5 + $0x34] ss:$8 sps:$4 sm:$0xff]   ;;  %v908_v9 = vld [vmem:[#allocation5 + $0x30] ss:$8 sps:$4 sm:$0xff]   ;;  %v909_v10 = vld [vmem:[#allocation5 + $0x24] ss:$8 sps:$4 sm:$0xff]  }
  0x38   :  { %v911_v11 = vld [vmem:[#allocation5 + $0x20] ss:$8 sps:$4 sm:$0xff]   ;;  %v912_v12 = vld [vmem:[#allocation5 + $0x14] ss:$8 sps:$4 sm:$0xff]   ;;  %v914_v13 = vld [vmem:[#allocation5 + $0x10] ss:$8 sps:$4 sm:$0xff]  }
  0x39   :  { %v1177_v14 = vld [vmem:[#allocation2] sm:$0xff]  ;;  %v947_v18 = vld [vmem:[#allocation7 + $0x64] ss:$8 sps:$4 sm:$0xff]   ;;  %v917_v20 = vld [vmem:[#allocation5] ss:$8 sps:$4 sm:$0xff]  }
  0x3a   :  { %296 = vmatpush1.bf16.msra.mxu0 %v899_v3  ;;  %v781_v15 = vcombine.high %v1177_v14, %v1177_v14  ;;  %v944_v16 = vld [vmem:[#allocation7 + $0x74] ss:$8 sps:$4 sm:$0xff]   ;;  %v946_v17 = vld [vmem:[#allocation7 + $0x70] ss:$8 sps:$4 sm:$0xff]   ;;  %v915_v19 = vld [vmem:[#allocation5 + $0x4] ss:$8 sps:$4 sm:$0xff]   ;;  %v780_v55 = vcombine.low %v1177_v14, %v1177_v14 }
  0x3b   :  { %297 = vmatprep.subr.bf16.mxu0 %v900_v4  ;;  %542 = vmatprep.subr.bf16.mxu1 %v944_v16  ;;  %v949_v21 = vld [vmem:[#allocation7 + $0x60] ss:$8 sps:$4 sm:$0xff]   ;;  %v950_v22 = vld [vmem:[#allocation7 + $0x54] ss:$8 sps:$4 sm:$0xff]   ;;  %v920_v24 = vld [vmem:[#allocation5 + $0xf0] ss:$8 sps:$4 sm:$0xff]  }
  0x3c   :  { %325 = vmatprep.mubr.bf16.mxu0 %v781_v15  ;;  %543 = vmatpush1.bf16.msra.mxu1 %v946_v17  ;;  %v918_v23 = vld [vmem:[#allocation5 + $0xf4] ss:$8 sps:$4 sm:$0xff]   ;;  %v952_v25 = vld [vmem:[#allocation7 + $0x50] ss:$8 sps:$4 sm:$0xff]   ;;  %v953_v26 = vld [vmem:[#allocation7 + $0x44] ss:$8 sps:$4 sm:$0xff]   ;;  %v116_v15 = vlaneseq }
  0x3d   :  { %544 = vmatprep.subr.bf16.mxu1 %v947_v18  ;;  %v921_v27 = vld [vmem:[#allocation5 + $0xe4] ss:$8 sps:$4 sm:$0xff]   ;;  %v923_v28 = vld [vmem:[#allocation5 + $0xe0] ss:$8 sps:$4 sm:$0xff]   ;;  %v956_v30 = vld [vmem:[#allocation7 + $0x34] ss:$8 sps:$4 sm:$0xff]  }
  0x3e   :  { %298 = vmatpush1.bf16.msra.mxu0 %v902_v5  ;;  %v955_v29 = vld [vmem:[#allocation7 + $0x40] ss:$8 sps:$4 sm:$0xff]   ;;  %v924_v31 = vld [vmem:[#allocation5 + $0xd4] ss:$8 sps:$4 sm:$0xff]   ;;  %v926_v32 = vld [vmem:[#allocation5 + $0xd0] ss:$8 sps:$4 sm:$0xff]  }
  0x3f   :  { %299 = vmatprep.subr.bf16.mxu0 %v903_v6  ;;  %v958_v33 = vld [vmem:[#allocation7 + $0x30] ss:$8 sps:$4 sm:$0xff]   ;;  %v959_v34 = vld [vmem:[#allocation7 + $0x24] ss:$8 sps:$4 sm:$0xff]   ;;  %v961_v36 = vld [vmem:[#allocation7 + $0x20] ss:$8 sps:$4 sm:$0xff]  }
  0x40   :  { %545 = vmatpush1.bf16.msra.mxu1 %v949_v21  ;;  %v927_v35 = vld [vmem:[#allocation5 + $0xc4] ss:$8 sps:$4 sm:$0xff]   ;;  %v929_v37 = vld [vmem:[#allocation5 + $0xc0] ss:$8 sps:$4 sm:$0xff]   ;;  %v962_v38 = vld [vmem:[#allocation7 + $0x14] ss:$8 sps:$4 sm:$0xff]  }
  0x41   :  { %546 = vmatprep.subr.bf16.mxu1 %v950_v22  ;;  %v930_v39 = vld [vmem:[#allocation5 + $0xb4] ss:$8 sps:$4 sm:$0xff]   ;;  %v964_v40 = vld [vmem:[#allocation7 + $0x10] ss:$8 sps:$4 sm:$0xff]   ;;  %v965_v42 = vld [vmem:[#allocation7 + $0x4] ss:$8 sps:$4 sm:$0xff]  }
  0x42   :  { %300 = vmatpush1.bf16.msra.mxu0 %v905_v7  ;;  %v932_v41 = vld [vmem:[#allocation5 + $0xb0] ss:$8 sps:$4 sm:$0xff]   ;;  %v933_v43 = vld [vmem:[#allocation5 + $0xa4] ss:$8 sps:$4 sm:$0xff]   ;;  %v967_v44 = vld [vmem:[#allocation7] ss:$8 sps:$4 sm:$0xff]  }
  0x43   :  { %301 = vmatprep.subr.bf16.mxu0 %v906_v8  ;;  %v935_v45 = vld [vmem:[#allocation5 + $0xa0] ss:$8 sps:$4 sm:$0xff]   ;;  %v968_v46 = vld [vmem:[#allocation7 + $0xf4] ss:$8 sps:$4 sm:$0xff]   ;;  %v970_v48 = vld [vmem:[#allocation7 + $0xf0] ss:$8 sps:$4 sm:$0xff]  }
  0x44   :  { %547 = vmatpush1.bf16.msra.mxu1 %v952_v25  ;;  %v936_v47 = vld [vmem:[#allocation5 + $0x94] ss:$8 sps:$4 sm:$0xff]   ;;  %v938_v49 = vld [vmem:[#allocation5 + $0x90] ss:$8 sps:$4 sm:$0xff]   ;;  %v971_v50 = vld [vmem:[#allocation7 + $0xe4] ss:$8 sps:$4 sm:$0xff]  }
  0x45   :  { %548 = vmatprep.subr.bf16.mxu1 %v953_v26  ;;  %v939_v51 = vld [vmem:[#allocation5 + $0x84] ss:$8 sps:$4 sm:$0xff]   ;;  %v973_v52 = vld [vmem:[#allocation7 + $0xe0] ss:$8 sps:$4 sm:$0xff]   ;;  %v974_v54 = vld [vmem:[#allocation7 + $0xd4] ss:$8 sps:$4 sm:$0xff]  }
  0x46   :  { %302 = vmatpush1.bf16.msra.mxu0 %v908_v9  ;;  %v941_v53 = vld [vmem:[#allocation5 + $0x80] ss:$8 sps:$4 sm:$0xff]   ;;  %v976_v56 = vld [vmem:[#allocation7 + $0xd0] ss:$8 sps:$4 sm:$0xff]   ;;  %v977_v57 = vld [vmem:[#allocation7 + $0xc4] ss:$8 sps:$4 sm:$0xff]  }
  0x47   :  { %303 = vmatprep.subr.bf16.mxu0 %v909_v10  ;;  %v979_v58 = vld [vmem:[#allocation7 + $0xc0] ss:$8 sps:$4 sm:$0xff]   ;;  %v980_v59 = vld [vmem:[#allocation7 + $0xb4] ss:$8 sps:$4 sm:$0xff]   ;;  %v982_v60 = vld [vmem:[#allocation7 + $0xb0] ss:$8 sps:$4 sm:$0xff]  }
  0x48   :  { %549 = vmatpush1.bf16.msra.mxu1 %v955_v29  ;;  %v983_v61 = vld [vmem:[#allocation7 + $0xa4] ss:$8 sps:$4 sm:$0xff]   ;;  %v985_v62 = vld [vmem:[#allocation7 + $0xa0] ss:$8 sps:$4 sm:$0xff]   ;;  %v986_v63 = vld [vmem:[#allocation7 + $0x94] ss:$8 sps:$4 sm:$0xff]  }
  0x49   :  { %550 = vmatprep.subr.bf16.mxu1 %v956_v30  ;;  %v988_v0 = vld [vmem:[#allocation7 + $0x90] ss:$8 sps:$4 sm:$0xff]   ;;  %v989_v1 = vld [vmem:[#allocation7 + $0x84] ss:$8 sps:$4 sm:$0xff]   ;;  %v991_v2 = vld [vmem:[#allocation7 + $0x80] ss:$8 sps:$4 sm:$0xff]  }
  0x4a   :  { %304 = vmatpush1.bf16.msra.mxu0 %v911_v11  ;;  %v992_v3 = vld [vmem:[#allocation8 + $0x78] sm:$0xff]   ;;  %v994_v5 = vld [vmem:[#allocation8 + $0x70] sm:$0xff]   ;;  %v996_v7 = vld [vmem:[#allocation8 + $0x68] sm:$0xff]   ;;  %v117_v16 = vshrl.u32 %v116_v15, 7 }
  0x4b   :  { %305 = vmatprep.subr.bf16.mxu0 %v912_v12  ;;  %v993_v4 = vld [vmem:[#allocation8 + $0x38] sm:$0xff]   ;;  %v995_v6 = vld [vmem:[#allocation8 + $0x30] sm:$0xff]   ;;  %v997_v8 = vld [vmem:[#allocation8 + $0x28] sm:$0xff]  }
  0x4c   :  { %551 = vmatpush1.bf16.msra.mxu1 %v958_v33  ;;  %v998_v9 = vld [vmem:[#allocation8 + $0x60] sm:$0xff]   ;;  %v1000_v11 = vld [vmem:[#allocation8 + $0x58] sm:$0xff]   ;;  %v1003_v14 = vld [vmem:[#allocation8 + $0x10] sm:$0xff]   ;;  %v118_v17 = vsub.s32 0, %v117_v16 }
  0x4d   :  { %552 = vmatprep.subr.bf16.mxu1 %v959_v34  ;;  %v999_v10 = vld [vmem:[#allocation8 + $0x20] sm:$0xff]   ;;  %v1001_v12 = vld [vmem:[#allocation8 + $0x18] sm:$0xff]   ;;  %v1005_v33 = vld [vmem:[#allocation8 + $0x8] sm:$0xff]  }
  0x4e   :  { %306 = vmatpush1.bf16.msra.mxu0 %v914_v13  ;;  %v1002_v13 = vld [vmem:[#allocation8 + $0x50] sm:$0xff]   ;;  %v114_v18 = vld [vmem:[%s1197_s2] sm:$0x3]  ;;  %v1006_v34 = vld [vmem:[#allocation8 + $0x40] sm:$0xff]  }
  0x4f   :  { %307 = vmatprep.subr.bf16.mxu0 %v915_v19  ;;  %v122_v19 = vsub.s32 1, %v117_v16 }
  0x50   :  { %553 = vmatpush1.bf16.msra.mxu1 %v961_v36  ;;  %v370_v36 = vld [vmem:[%s1199_s4] sm:$0x3]  ;;  %s1124_s4 = smov [#allocation10]  }
  0x51   :  { %554 = vmatprep.subr.bf16.mxu1 %v962_v38  ;;  %v123_v21 = vrot.slane %v114_v18, %v122_v19  ;;  %v379_v38 = vrot.slane %v370_v36, %v122_v19  ;;  %s769_s26 = sshll.u32 %s1124_s4, 4  ;;  %s770_s26 = int_to_ptr.vmem [resolvable:$true] %s769_s26 }
  0x52   :  { %308 = vmatpush1.bf16.msra.mxu0 %v917_v20  ;;  %v119_v20 = vrot.slane %v114_v18, %v118_v17  ;;  %s1088_s27 = scalar_lea.vmem %s770_s26, 128  ;;  %p1093_p7 = scmp.lt.s32.totalorder %s770_s26, %s770_s26 }
  0x53   :  { %309 = vmatprep.subr.bf16.mxu0 %v918_v23  ;;  %p1089_p6 = scmp.ne.s32.totalorder %s770_s26, %s1088_s27  ;;  %p1094_p8 = scmp.lt.s32.totalorder %s1088_s27, %s1088_s27 }
  0x54   :  { %555 = vmatpush1.bf16.msra.mxu1 %v964_v40 }
  0x55   :  { %556 = vmatprep.subr.bf16.mxu1 %v965_v42  ;;  %p1095_p9 = por %p1094_p8, %p1093_p7 }
  0x56   :  { %310 = vmatpush2.bf16.msra.mxu0 %v920_v24 }
  0x57   :  { %311 = vmatprep.subr.bf16.mxu0 %v921_v27  ;;  %p1096_p10 = pnand %p1095_p9, %p1089_p6 }
  0x58   :  { %557 = vmatpush1.bf16.msra.mxu1 %v967_v44 }
  0x59   :  { %558 = vmatprep.subr.bf16.mxu1 %v968_v46 }
  0x5a   :  { %312 = vmatpush2.bf16.msra.mxu0 %v923_v28 }
  0x5b   :  { %313 = vmatprep.subr.bf16.mxu0 %v924_v31 }
  0x5c   :  { %559 = vmatpush2.bf16.msra.mxu1 %v970_v48 }
  0x5d   :  { %560 = vmatprep.subr.bf16.mxu1 %v971_v50  ;;  %v846_v50 = vld [vmem:[%s1201_s6] ss:$0 sm:$0xff] }
  0x5e   :  { %314 = vmatpush2.bf16.msra.mxu0 %v926_v32  ;;  %v1004_v32 = vld [vmem:[#allocation8 + $0x48] sm:$0xff]  }
  0x5f   :  { %315 = vmatprep.subr.bf16.mxu0 %v927_v35  ;;  %v1007_v35 = vld [vmem:[#allocation8] sm:$0xff]  }
  0x60   :  { %561 = vmatpush2.bf16.msra.mxu1 %v973_v52 }
  0x61   :  { %562 = vmatprep.subr.bf16.mxu1 %v974_v54 }
  0x62   :  { %316 = vmatpush2.bf16.msra.mxu0 %v929_v37  ;;  %v375_v37 = vrot.slane %v370_v36, %v118_v17 }
  0x63   :  { %317 = vmatprep.subr.bf16.mxu0 %v930_v39 }
  0x64   :  { %563 = vmatpush2.bf16.msra.mxu1 %v976_v56 }
  0x65   :  { %564 = vmatprep.subr.bf16.mxu1 %v977_v57 }
  0x66   :  { %318 = vmatpush2.bf16.msra.mxu0 %v932_v41 }
  0x67   :  { %319 = vmatprep.subr.bf16.mxu0 %v933_v43 }
  0x68   :  { %565 = vmatpush2.bf16.msra.mxu1 %v979_v58 }
  0x69   :  { %566 = vmatprep.subr.bf16.mxu1 %v980_v59 }
  0x6a   :  { %320 = vmatpush2.bf16.msra.mxu0 %v935_v45 }
  0x6b   :  { %321 = vmatprep.subr.bf16.mxu0 %v936_v47 }
  0x6c   :  { %567 = vmatpush2.bf16.msra.mxu1 %v982_v60 }
  0x6d   :  { %568 = vmatprep.subr.bf16.mxu1 %v983_v61 }
  0x6e   :  { %322 = vmatpush2.bf16.msra.mxu0 %v938_v49 }
  0x6f   :  { %323 = vmatprep.subr.bf16.mxu0 %v939_v51 }
  0x70   :  { %569 = vmatpush2.bf16.msra.mxu1 %v985_v62 }
  0x71   :  { %570 = vmatprep.subr.bf16.mxu1 %v986_v63 }
  0x72   :  { %324 = vmatpush2.bf16.msra.mxu0 %v941_v53 }
  0x73   :  { %863 = vmatprep.subr.bf16.mxu0 %v992_v3 }
  0x74   :  { %571 = vmatpush2.bf16.msra.mxu1 %v988_v0 }
  0x75   :  { %326 = vmatmul.mubr.bf16.vlgmr.msra.gmra.mxu0 %v780_v55  ;;  %572 = vmatprep.subr.bf16.mxu1 %v989_v1 }
  0x76   :  { %864 = vmatpush3.bf16.msra.mxu0 %v993_v4 }
  0x77   :  { %865 = vmatprep.subr.bf16.mxu0 %v994_v5 }
  0x78   :  { %573 = vmatpush2.bf16.msra.mxu1 %v991_v2 }
  0x7a   :  { %866 = vmatpush3.bf16.msra.mxu0 %v995_v6 }
  0x7b   :  { %867 = vmatprep.subr.bf16.mxu0 %v996_v7 }
  0x7e   :  { %868 = vmatpush3.bf16.msra.mxu0 %v997_v8 }
  0x7f   :  { %869 = vmatprep.subr.bf16.mxu0 %v998_v9 }
  0x82   :  { %870 = vmatpush3.bf16.msra.mxu0 %v999_v10 }
  0x83   :  { %871 = vmatprep.subr.bf16.mxu0 %v1000_v11 }
  0x86   :  { %872 = vmatpush3.bf16.msra.mxu0 %v1001_v12 }
  0x87   :  { %873 = vmatprep.subr.bf16.mxu0 %v1002_v13 }
  0x8a   :  { %874 = vmatpush3.bf16.msra.mxu0 %v1003_v14 }
  0x8b   :  { %875 = vmatprep.subr.bf16.mxu0 %v1004_v32 }
  0x8e   :  { %876 = vmatpush3.bf16.msra.mxu0 %v1005_v33 }
  0x8f   :  { %877 = vmatprep.subr.bf16.mxu0 %v1006_v34 }
  0x92   :  { %878 = vmatpush3.bf16.msra.mxu0 %v1007_v35 }
 0x135   :  { %v327_v22 = vpop.f32.mrf.mxu0 }
 0x136   :  { %v328_v23 = vadd.f32 %v327_v22, %v119_v20 }
 0x137   :  { %v329_v24 = vpop.f32.mrf.mxu0 }
 0x138   :  { %v330_v25 = vadd.f32 %v329_v24, %v123_v21  ;;  %v334_v26 = vmax.f32 %v328_v23, 0.0 }
 0x139   :  { %v331_v27 = vpop.f32.mrf.mxu0 }
 0x13a   :  { %v335_v28 = vmax.f32 %v330_v25, 0.0  ;;  %v336_v31 = vpack.c.bf16 %v334_v26, %v334_v26 }
 0x13b   :  { %v332_v29 = vpop.f32.mrf.mxu0 }
 0x13c   :  { %v337_v30 = vpack.c.bf16 %v335_v28, %v335_v28 }
 0x13e   :  { %574 = vmatprep.mubr.bf16.mxu1 %v337_v30 }
 0x13f   :  { %575 = vmatmul.mubr.bf16.vlgmr.msra.gmra.mxu1 %v336_v31 }
 0x1ff   :  { %v576_v39 = vpop.f32.mrf.mxu1 }
 0x200   :  { %v577_v40 = vadd.f32 %v576_v39, %v375_v37 }
 0x201   :  { %v578_v41 = vpop.f32.mrf.mxu1 }
 0x202   :  { %v579_v42 = vadd.f32 %v578_v41, %v379_v38  ;;  %v583_v43 = vmax.f32 %v577_v40, 0.0 }
 0x203   :  { %v580_v44 = vpop.f32.mrf.mxu1 }
 0x204   :  { %v584_v45 = vmax.f32 %v579_v42, 0.0  ;;  %v585_v48 = vpack.c.bf16 %v583_v43, %v583_v43 }
 0x205   :  { %v581_v46 = vpop.f32.mrf.mxu1 }
 0x206   :  { %v586_v47 = vpack.c.bf16 %v584_v45, %v584_v45 }
 0x208   :  { %754 = vmatprep.mubr.bf16.mxu0 %v586_v47 }
 0x209   :  { %755 = vmatmul.mubr.bf16.vlgmr.msra.gmra.mxu0 %v585_v48 }
 0x2c9   :  { %v879_v49 = vpop.f32.mrf.mxu0 }
 0x2cb   :  { %v880_v51 = vpop.f32.mrf.mxu0 }
 0x2cc   :  { %v881_v52 = vadd.f32 %v880_v51, %v879_v49 }
 0x2cd   :  { %v882_v53 = vpop.f32.mrf.mxu0 }
 0x2ce   :  { %v757_v54 = vadd.f32 %v881_v52, %v846_v50 }
 0x2cf   :  { %v883_v55 = vpop.f32.mrf.mxu0 }
 0x2d0   :  { %762 = vst [vmem:[#allocation10] sm:$0xff] %v757_v54 }
 0x2d1   :  { %1099 = shalt.err (!%p1096_p10)
}
 0x2d2   :  { %772 = dma.vmem_to_hbm [thread:$0]  %s770_s26, 128, %s1202_s7, [#allocation4]  }
 0x2d3   :  { %1114 = dma.done.wait [#allocation4], 128  }
 0x2d4   :  { %1115 = vsyncadd [#allocation4], 4294967168 }
 0x2d5   :  { %776 = vsyncpa [#allocation3], 1 }
 0x2d6   :  { %777 = vsyncpa [#allocation6], 1 }
 0x2d7   :  { %778 = vsyncpa [#allocation9], 1 }
 0x2d8   :  { %779 = vsyncpa [#allocation4], 1 }

</bundles_post_ra>
